<compile_context>
chip_gen: v7x
topology: tpu7x:2x2x1
jax: 0.10.0
libtpu: 0.0.40
codegen_flags: <defaults>
</compile_context>

<pallas_src>
import jax
import jax.numpy as jnp
from jax.experimental import pallas as pl
from jax.experimental.pallas import tpu as pltpu


# ----------------------------------------------------------------------------
# Kernel
# ----------------------------------------------------------------------------
def _make_actor_kernel(act_dtype):
    """act_dtype: dtype used for the tanh activations (f32, or bf16 on
    v6e/v7x when the bf16-matmul path is enabled)."""

    def actor_kernel(x_ref, w1_ref, b1_ref, w2_ref, b2_ref, w3_ref, b3_ref,
                     o_ref):
        wdt = w1_ref.dtype                      # matmul input dtype (f32/bf16)
        x = x_ref[...].astype(wdt)

        # Layer 1: MXU dot with f32 accumulation, bias in f32, tanh in act_dtype.
        z1 = jnp.dot(x, w1_ref[...], preferred_element_type=jnp.float32)
        h1 = jnp.tanh((z1 + b1_ref[...]).astype(act_dtype))

        # Layer 2.
        z2 = jnp.dot(h1.astype(wdt), w2_ref[...],
                     preferred_element_type=jnp.float32)
        h2 = jnp.tanh((z2 + b2_ref[...]).astype(act_dtype))

        # Layer 3 (no activation); output stored unpadded.
        out = jnp.dot(h2.astype(wdt), w3_ref[...],
                      preferred_element_type=jnp.float32) + b3_ref[...]
        o_ref[...] = out.astype(o_ref.dtype)

    return actor_kernel


# ----------------------------------------------------------------------------
# Helpers
# ----------------------------------------------------------------------------
def _round_up(n, m):
    return ((n + m - 1) // m) * m


def _num_tensorcores():
    """Best-effort TensorCores-per-chip (2 on dual-TC chips like v7x, else 1)."""
    try:
        info = pltpu.get_tpu_info()
        for attr in ("num_cores", "num_tensorcores", "cores_per_chip",
                     "num_cores_per_chip", "tensorcores_per_chip"):
            n = getattr(info, attr, None)
            if isinstance(n, int) and n > 0:
                return min(n, 2)
    except Exception:
        pass
    try:
        n = getattr(jax.devices()[0], "num_cores", None)
        if isinstance(n, int) and n > 0:
            return min(n, 2)
    except Exception:
        pass
    return 1


_SINGLE_BUFFER_PARAMS_OK = None


def _single_buffer_params_supported():
    """Probe once whether pipeline_mode=pl.Buffered(1) lowers & runs correctly
    on this jax/Mosaic build (used to single-buffer the resident parameters)."""
    global _SINGLE_BUFFER_PARAMS_OK
    if _SINGLE_BUFFER_PARAMS_OK is None:
        try:
            def _k(w_ref, o_ref):
                o_ref[...] = w_ref[...] + 1.0

            w = jnp.zeros((8, 128), jnp.float32)
            out = pl.pallas_call(
                _k,
                out_shape=jax.ShapeDtypeStruct((16, 128), jnp.float32),
                grid=(2,),
                in_specs=[pl.BlockSpec((8, 128), lambda i: (0, 0),
                                       pipeline_mode=pl.Buffered(1))],
                out_specs=pl.BlockSpec((8, 128), lambda i: (i, 0)),
            )(w)
            jax.block_until_ready(out)
            _SINGLE_BUFFER_PARAMS_OK = bool(jnp.all(out == 1.0))
        except Exception:
            _SINGLE_BUFFER_PARAMS_OK = False
    return _SINGLE_BUFFER_PARAMS_OK


# ----------------------------------------------------------------------------
# Wrapper
# ----------------------------------------------------------------------------
def actor_forward(state, params, *, block_batch=512, num_cores=None,
                  use_bf16_matmul=False, bf16_tanh=False,
                  fallback_below_batch=0):
    """state: (B, num_state) -> action logits: (B, num_action).

    use_bf16_matmul : cast weights/activations fed to the MXU to bf16
                      (recommended on v6e/v7x; on v5e it still halves the
                      weight DMA bytes -- measure).
    bf16_tanh       : compute tanh in bf16 (v6e/v7x only; needs bf16 matmul).
    num_cores       : grid steps = number of TensorCores (auto if None).
    """
    w1, b1, w2, b2, w3, b3 = params
    B, S = state.shape
    H = w1.shape[1]
    A = w3.shape[1]

    # Trivially small calls: custom-call + grid overhead exceeds the work;
    # let XLA fuse instead (disabled by default so demos exercise the kernel).
    if B < fallback_below_batch:
        return actor_reference(state, params, use_bf16_matmul=use_bf16_matmul,
                               bf16_tanh=bf16_tanh)

    # ---- lane-dense hidden width: zero-pad H to a multiple of 128 ----------
    # Exact transform: padded hidden units get tanh(0 + 0) = 0 and multiply
    # zero rows of the next weight, so they contribute nothing.
    Hp = _round_up(max(H, 1), 128)
    if Hp != H:
        w1 = jnp.zeros((S, Hp), w1.dtype).at[:, :H].set(w1)
        b1 = jnp.zeros((1, Hp), b1.dtype).at[:, :H].set(b1)
        w2 = jnp.zeros((Hp, Hp), w2.dtype).at[:H, :H].set(w2)
        b2 = jnp.zeros((1, Hp), b2.dtype).at[:, :H].set(b2)
        w3 = jnp.zeros((Hp, A), w3.dtype).at[:H, :].set(w3)

    # ---- optional bf16 weights for the MXU ----------------------------------
    wdt = jnp.bfloat16 if use_bf16_matmul else jnp.float32
    act_dt = jnp.bfloat16 if (use_bf16_matmul and bf16_tanh) else jnp.float32
    w1c, w2c, w3c = (w.astype(wdt) for w in (w1, w2, w3))
    wbytes = 2 if use_bf16_matmul else 4

    # ---- batch tiling: exactly one tile per TensorCore (capped) -------------
    if num_cores is None:
        num_cores = _num_tensorcores()
    steps = max(1, int(num_cores))
    tm = _round_up(pl.cdiv(B, steps), 8)
    tm = min(tm, _round_up(max(block_batch, 8), 8))
    if tm >= B:
        tm = B                      # single ragged-free tile over whole batch
    grid = (pl.cdiv(B, tm),)

    cost = pl.CostEstimate(
        flops=2 * B * (S * Hp + Hp * Hp + Hp * A),
        transcendentals=2 * B * Hp,
        bytes_accessed=(
            4 * B * S + 4 * B * A                   # activations in / out
            + wbytes * (S * Hp + Hp * Hp + Hp * A)  # weights
            + 4 * (Hp + Hp + A)                     # biases (f32)
        ),
    )

    # Resident params: constant index_map; single-buffer when supported.
    single_buf = _single_buffer_params_supported()

    def param_spec(shape):
        if single_buf:
            return pl.BlockSpec(shape, lambda i: (0, 0),
                                pipeline_mode=pl.Buffered(1))
        return pl.BlockSpec(shape, lambda i: (0, 0))

    kernel = _make_actor_kernel(act_dt)

    out = pl.pallas_call(
        kernel,
        out_shape=jax.ShapeDtypeStruct((B, A), jnp.float32),
        grid=grid,
        in_specs=[
            pl.BlockSpec((tm, S), lambda i: (i, 0)),   # streamed activations
            param_spec((S, Hp)),                       # resident weights/biases
            param_spec((1, Hp)),
            param_spec((Hp, Hp)),
            param_spec((1, Hp)),
            param_spec((Hp, A)),
            param_spec((1, A)),
        ],
        out_specs=pl.BlockSpec((tm, A), lambda i: (i, 0)),  # unpadded writeback
        compiler_params=pltpu.CompilerParams(
            dimension_semantics=("parallel",),
        ),
        cost_estimate=cost,
    )(state, w1c, b1, w2c, b2, w3c, b3)

    return out


# ----------------------------------------------------------------------------
# Pure-JAX reference with the same dtype policy as the kernel
# ----------------------------------------------------------------------------
def actor_reference(state, params, *, use_bf16_matmul=False, bf16_tanh=False):
    w1, b1, w2, b2, w3, b3 = params
    wdt = jnp.bfloat16 if use_bf16_matmul else jnp.float32
    adt = jnp.bfloat16 if (use_bf16_matmul and bf16_tanh) else jnp.float32

    def lin(x, w, b):
        return jnp.dot(x.astype(wdt), w.astype(wdt),
                       preferred_element_type=jnp.float32) + b

    h1 = jnp.tanh(lin(state, w1, b1).astype(adt))
    h2 = jnp.tanh(lin(h1, w2, b2).astype(adt))
    return lin(h2, w3, b3)


def init_actor_params(key, num_state, num_nodes, num_action):
    """Synthetic parameters matching nn.Linear's default init, stored as
    (in_features, out_features) so the kernel computes y = x @ W + b."""
    k1, k2, k3, k4, k5, k6 = jax.random.split(key, 6)

    def uniform(k, shape, fan_in):
        bound = 1.0 / jnp.sqrt(fan_in)
        return jax.random.uniform(k, shape, jnp.float32, -bound, bound)

    w1 = uniform(k1, (num_state, num_nodes), num_state)
    b1 = uniform(k2, (1, num_nodes), num_state)
    w2 = uniform(k3, (num_nodes, num_nodes), num_nodes)
    b2 = uniform(k4, (1, num_nodes), num_nodes)
    w3 = uniform(k5, (num_nodes, num_action), num_nodes)
    b3 = uniform(k6, (1, num_action), num_nodes)
    return (w1, b1, w2, b2, w3, b3)


if __name__ == "__main__":
    key = jax.random.PRNGKey(0)
    kA_s, kA_p, kB_s, kB_p = jax.random.split(key, 4)

    # --- config A: tiny shapes (f32 everywhere, single grid step) -----------
    batch_a, num_state_a, num_nodes_a, num_action_a = 2, 8, 32, 1
    state_a = jax.random.normal(kA_s, (batch_a, num_state_a), jnp.float32)
    params_a = init_actor_params(kA_p, num_state_a, num_nodes_a, num_action_a)

    out_a = actor_forward(state_a, params_a, use_bf16_matmul=False)
    jax.block_until_ready(out_a)
    ref_a = actor_reference(state_a, params_a, use_bf16_matmul=False)
    assert out_a.shape == (batch_a, num_action_a)
    assert jnp.allclose(out_a, ref_a, atol=1e-4, rtol=1e-4)

    # --- config B: MXU-aligned widths, bf16 matmul + bf16 tanh (v6e/v7x) ----
    batch_b, num_state_b, num_nodes_b, num_action_b = 512, 16, 128, 4
    state_b = jax.random.normal(kB_s, (batch_b, num_state_b), jnp.float32)
    params_b = init_actor_params(kB_p, num_state_b, num_nodes_b, num_action_b)

    out_b = actor_forward(state_b, params_b, block_batch=512,
                          use_bf16_matmul=True, bf16_tanh=True)
    jax.block_until_ready(out_b)
    ref_b = actor_reference(state_b, params_b, use_bf16_matmul=True,
                            bf16_tanh=True)
    assert out_b.shape == (batch_b, num_action_b)
    assert jnp.allclose(out_b, ref_b, atol=5e-2, rtol=5e-2)

    print("KERNEL_OK")
</pallas_src>

<mosaic_0001>
module attributes {stable_mosaic.version = 11 : i64} {
  func.func @_k(%arg0: i32, %arg1: memref<8x128xf32, #tpu.memory_space<vmem>>, %arg2: memref<8x128xf32, #tpu.memory_space<vmem>>) attributes {dimension_semantics = [#tpu.dimension_semantics<arbitrary>], iteration_bounds = array<i64: 2>, scalar_prefetch = 0 : i64, scratch_operands = 0 : i64, tpu.core_type = #tpu.core_type<tc>, window_params = [{pipeline_mode = #tpu.pipeline_mode<synchronous>, transform_indices = @transform_0, window_bounds = array<i64: 8, 128>}, {transform_indices = @transform_1, window_bounds = array<i64: 8, 128>}]} {
    %c0 = arith.constant 0 : index
    %c0_0 = arith.constant 0 : index
    %0 = vector.load %arg1[%c0, %c0_0] : memref<8x128xf32, #tpu.memory_space<vmem>>, vector<8x128xf32>
    %cst = arith.constant 1.000000e+00 : f32
    %1 = vector.broadcast %cst : f32 to vector<8x128xf32>
    %2 = arith.addf %0, %1 : vector<8x128xf32>
    %c0_1 = arith.constant 0 : index
    %c0_2 = arith.constant 0 : index
    %3 = vector.load %arg2[%c0_1, %c0_2] : memref<8x128xf32, #tpu.memory_space<vmem>>, vector<8x128xf32>
    tpu.vector_store %arg2[%c0_1, %c0_2], %2 {strides = array<i32>} : memref<8x128xf32, #tpu.memory_space<vmem>>, vector<8x128xf32>,
    return
  }
  func.func @transform_0(%arg0: i32) -> (i32, i32) {
    %c0_i32 = arith.constant 0 : i32
    %c0_i32_0 = arith.constant 0 : i32
    %c0_i32_1 = arith.constant 0 : i32
    return %c0_i32, %c0_i32_0 : i32, i32
  }
  func.func @transform_1(%arg0: i32) -> (i32, i32) {
    %c0_i32 = arith.constant 0 : i32
    %c0_i32_0 = arith.constant 0 : i32
    return %arg0, %c0_i32 : i32, i32
  }
}

module attributes {stable_mosaic.version = 11 : i64} {
  func.func @actor_kernel(%arg0: i32, %arg1: memref<2x8xf32, #tpu.memory_space<vmem>>, %arg2: memref<8x128xf32, #tpu.memory_space<vmem>>, %arg3: memref<1x128xf32, #tpu.memory_space<vmem>>, %arg4: memref<128x128xf32, #tpu.memory_space<vmem>>, %arg5: memref<1x128xf32, #tpu.memory_space<vmem>>, %arg6: memref<128x1xf32, #tpu.memory_space<vmem>>, %arg7: memref<1x1xf32, #tpu.memory_space<vmem>>, %arg8: memref<2x1xf32, #tpu.memory_space<vmem>>) attributes {dimension_semantics = [#tpu.dimension_semantics<parallel>], iteration_bounds = array<i64: 1>, scalar_prefetch = 0 : i64, scratch_operands = 0 : i64, tpu.core_type = #tpu.core_type<tc>, window_params = [{transform_indices = @transform_0, window_bounds = array<i64: 2, 8>}, {pipeline_mode = #tpu.pipeline_mode<synchronous>, transform_indices = @transform_1, window_bounds = array<i64: 8, 128>}, {pipeline_mode = #tpu.pipeline_mode<synchronous>, transform_indices = @transform_2, window_bounds = array<i64: 1, 128>}, {pipeline_mode = #tpu.pipeline_mode<synchronous>, transform_indices = @transform_3, window_bounds = array<i64: 128, 128>}, {pipeline_mode = #tpu.pipeline_mode<synchronous>, transform_indices = @transform_4, window_bounds = array<i64: 1, 128>}, {pipeline_mode = #tpu.pipeline_mode<synchronous>, transform_indices = @transform_5, window_bounds = array<i64: 128, 1>}, {pipeline_mode = #tpu.pipeline_mode<synchronous>, transform_indices = @transform_6, window_bounds = array<i64: 1, 1>}, {transform_indices = @transform_7, window_bounds = array<i64: 2, 1>}]} {
    %c0 = arith.constant 0 : index
    %c0_0 = arith.constant 0 : index
    %0 = vector.load %arg1[%c0, %c0_0] : memref<2x8xf32, #tpu.memory_space<vmem>>, vector<2x8xf32>
    %c0_1 = arith.constant 0 : index
    %c0_2 = arith.constant 0 : index
    %1 = vector.load %arg2[%c0_1, %c0_2] : memref<8x128xf32, #tpu.memory_space<vmem>>, vector<8x128xf32>
    %cst = arith.constant dense<0.000000e+00> : vector<2x128xf32>
    %2 = tpu.matmul %0, %1, %cst {dimension_numbers = #tpu.dot_dimension_numbers<[1], [0], [0], [1], [0, 0, 1, 1], [], []>} : vector<2x8xf32>, vector<8x128xf32>, vector<2x128xf32> -> vector<2x128xf32>
    %c0_3 = arith.constant 0 : index
    %c0_4 = arith.constant 0 : index
    %3 = vector.load %arg3[%c0_3, %c0_4] : memref<1x128xf32, #tpu.memory_space<vmem>>, vector<1x128xf32>
    %4 = vector.broadcast %3 : vector<1x128xf32> to vector<2x128xf32>
    %5 = arith.addf %2, %4 : vector<2x128xf32>
    %6 = math.tanh %5 : vector<2x128xf32>
    %c0_5 = arith.constant 0 : index
    %c0_6 = arith.constant 0 : index
    %7 = vector.load %arg4[%c0_5, %c0_6] : memref<128x128xf32, #tpu.memory_space<vmem>>, vector<128x128xf32>
    %cst_7 = arith.constant dense<0.000000e+00> : vector<2x128xf32>
    %8 = tpu.matmul %6, %7, %cst_7 {dimension_numbers = #tpu.dot_dimension_numbers<[1], [0], [0], [1], [0, 0, 1, 1], [], []>} : vector<2x128xf32>, vector<128x128xf32>, vector<2x128xf32> -> vector<2x128xf32>
    %c0_8 = arith.constant 0 : index
    %c0_9 = arith.constant 0 : index
    %9 = vector.load %arg5[%c0_8, %c0_9] : memref<1x128xf32, #tpu.memory_space<vmem>>, vector<1x128xf32>
    %10 = vector.broadcast %9 : vector<1x128xf32> to vector<2x128xf32>
    %11 = arith.addf %8, %10 : vector<2x128xf32>
    %12 = math.tanh %11 : vector<2x128xf32>
    %c0_10 = arith.constant 0 : index
    %c0_11 = arith.constant 0 : index
    %13 = vector.load %arg6[%c0_10, %c0_11] : memref<128x1xf32, #tpu.memory_space<vmem>>, vector<128x1xf32>
    %cst_12 = arith.constant dense<0.000000e+00> : vector<2x1xf32>
    %14 = tpu.matmul %12, %13, %cst_12 {dimension_numbers = #tpu.dot_dimension_numbers<[1], [0], [0], [1], [0, 0, 1, 1], [], []>} : vector<2x128xf32>, vector<128x1xf32>, vector<2x1xf32> -> vector<2x1xf32>
    %c0_13 = arith.constant 0 : index
    %c0_14 = arith.constant 0 : index
    %15 = vector.load %arg7[%c0_13, %c0_14] : memref<1x1xf32, #tpu.memory_space<vmem>>, vector<1x1xf32>
    %16 = vector.broadcast %15 : vector<1x1xf32> to vector<2x1xf32>
    %17 = arith.addf %14, %16 : vector<2x1xf32>
    %c0_15 = arith.constant 0 : index
    %c0_16 = arith.constant 0 : index
    %18 = vector.load %arg8[%c0_15, %c0_16] : memref<2x1xf32, #tpu.memory_space<vmem>>, vector<2x1xf32>
    tpu.vector_store %arg8[%c0_15, %c0_16], %17 {strides = array<i32>} : memref<2x1xf32, #tpu.memory_space<vmem>>, vector<2x1xf32>,
    return
  }
  func.func @transform_0(%arg0: i32) -> (i32, i32) {
    %c0_i32 = arith.constant 0 : i32
    %c0_i32_0 = arith.constant 0 : i32
    return %arg0, %c0_i32 : i32, i32
  }
  func.func @transform_1(%arg0: i32) -> (i32, i32) {
    %c0_i32 = arith.constant 0 : i32
    %c0_i32_0 = arith.constant 0 : i32
    %c0_i32_1 = arith.constant 0 : i32
    return %c0_i32, %c0_i32_0 : i32, i32
  }
  func.func @transform_2(%arg0: i32) -> (i32, i32) {
    %c0_i32 = arith.constant 0 : i32
    %c0_i32_0 = arith.constant 0 : i32
    %c0_i32_1 = arith.constant 0 : i32
    return %c0_i32, %c0_i32_0 : i32, i32
  }
  func.func @transform_3(%arg0: i32) -> (i32, i32) {
    %c0_i32 = arith.constant 0 : i32
    %c0_i32_0 = arith.constant 0 : i32
    %c0_i32_1 = arith.constant 0 : i32
    return %c0_i32, %c0_i32_0 : i32, i32
  }
  func.func @transform_4(%arg0: i32) -> (i32, i32) {
    %c0_i32 = arith.constant 0 : i32
    %c0_i32_0 = arith.constant 0 : i32
    %c0_i32_1 = arith.constant 0 : i32
    return %c0_i32, %c0_i32_0 : i32, i32
  }
  func.func @transform_5(%arg0: i32) -> (i32, i32) {
    %c0_i32 = arith.constant 0 : i32
    %c0_i32_0 = arith.constant 0 : i32
    %c0_i32_1 = arith.constant 0 : i32
    return %c0_i32, %c0_i32_0 : i32, i32
  }
  func.func @transform_6(%arg0: i32) -> (i32, i32) {
    %c0_i32 = arith.constant 0 : i32
    %c0_i32_0 = arith.constant 0 : i32
    %c0_i32_1 = arith.constant 0 : i32
    return %c0_i32, %c0_i32_0 : i32, i32
  }
  func.func @transform_7(%arg0: i32) -> (i32, i32) {
    %c0_i32 = arith.constant 0 : i32
    %c0_i32_0 = arith.constant 0 : i32
    return %arg0, %c0_i32 : i32, i32
  }
}

</mosaic_0001>

<bundles_post_ra>
// kernel: tpu_custom_call.1
= control target key start
LH: loop header
LB: loop body
LE: loop exit
PB: predicated region body
PF: predicated region fallthrough
CT: control target
= control target key end

     0   :  { %6 = vsyncpa [#allocation3], 0  ;;  %s482_s0 = inlined_call_operand.hbm [shape: f32[8,128], index: 0, kind: input, shape index: {}]   ;;  %s483_s1 = inlined_call_operand.hbm [shape: f32[16,128], index: 1, kind: output, shape index: {}]  }
   0x1   :  { %7 = vsyncpa [#allocation4], 0 }
   0x2   :  { %9 = vsyncpa [#allocation4 + $0x1], 0  ;;  %s352_s6 = smov 0   ;;  %s354_s7 = smov 0  }
   0x3   :  { %s356_s8 = smov 0   ;;  %s358_s9 = smov 0  }
   0x4 LB: > { %s373_s10 = sadd.s32 4294967295, %s338_s9   ;;  %s184_s11 = sadd.s32 4294967294, %s338_s9   ;;  %s338_s9 = sphi %s358_s9, %s499_s9   ;;  %s334_s8 = sphi %s356_s8, %s498_s8   ;;  %s330_s7 = sphi %s354_s7, %s497_s7   ;;  %s326_s6 = sphi %s352_s6, %s496_s6  }
   0x5   : > { %s377_s12 = sadd.s32 1, %s338_s9   ;;  %s43_s13 = sadd.s32 1, %s334_s8 }
   0x6   : > { %s40_s14 = ssub.s32 %s338_s9, %s377_s12  ;;  %p53_p0 = scmp.ne.s32.totalorder %s334_s8, %s330_s7 }
   0x7   : > { %p41_p1 = scmp.eq.s32.totalorder %s40_s14, 0  ;;  %p54_p2 = scmp.eq.s32.totalorder %s373_s10, 1 }
   0x8   : > { %p59_p3 = scmp.ne.s32.totalorder %s330_s7, %s326_s6  ;;  %p60_p4 = scmp.eq.s32.totalorder %s184_s11, 1 }
   0x9   : > { %s388_s15 = scalar_select %p41_p1, %s334_s8, %s43_s13  }
   0xa   : > { %p390_p5 = por %p54_p2, %p53_p0  ;;  %p394_p6 = por %p60_p4, %p59_p3 }
   0xb   : > { %p185_p7 = scmp.ge.s32.totalorder %s338_s9, 1  ;;  %p67_p8 = scmp.lt.s32.totalorder %s338_s9, 3 }
   0xc   : > { %s487_s16 = scalar_select %p390_p5, 1, 0 }
   0xd   : > { %s488_s17 = scalar_select %p394_p6, 1, 0 }
   0xe   : > { %p484_p9 = scmp.eq.s32.totalorder %s373_s10, 0  ;;  %p401_p10 = pnand %p185_p7, %p67_p8 }
   0xf   : > { %s340_s19 = smov [#allocation2]   ;;  %s244_s24 = scalar_lea.hbm %s482_s0, 128 }
  0x10   : > { %s489_s18 = scalar_select %p401_p10, 1, 0 }
  0x11   : > { %s80_s20 = sshll.u32 %s340_s19, 4  ;;  %p200_p11 = pneg %p401_p10  ;;  %s81_s20 = int_to_ptr.vmem [resolvable:$true] %s80_s20 }
  0x12   : > { %p245_p13 = scmp.ne.s32.totalorder %s482_s0, %s244_s24  ;;  %p251_p3 = scmp.lt.u32.totalorder %s244_s24, %s482_s0 }
  0x13   : > { %p409_p12 = pnand %p484_p9, %p200_p11 }
  0x15   : > { %p246_p0 = pneg %p409_p12 }
  0x17   : > { %p247_p1 = pnand %p246_p0, %p245_p13 }
  0x19   : > { %p248_p2 = pneg %p247_p1 }
  0x1b   : > { %p253_p4 = pnand %p251_p3, %p248_p2 }
  0x1d   : > { %256 = shalt.err (!%p253_p4)
}
  0x1e   : > { %s257_s29 = scalar_lea.vmem %s81_s20, 128  ;;  %p265_p9 = scmp.lt.s32.totalorder %s81_s20, %s81_s20 }
  0x1f   : > { %p258_p7 = scmp.ne.s32.totalorder %s81_s20, %s257_s29  ;;  %p266_p6 = scmp.lt.s32.totalorder %s257_s29, %s257_s29 }
  0x21   : > { %p260_p8 = pnand %p258_p7, %p246_p0  ;;  %p267_p5 = por %p266_p6, %p265_p9 }
  0x23   : > { %p261_p11 = pneg %p260_p8 }
  0x25   : > { %p268_p10 = pnand %p267_p5, %p261_p11 }
  0x27   : > { %271 = shalt.err (!%p268_p10)
}
  0x28   : > { %203 = dma.hbm_to_vmem [thread:$0]  (!%p409_p12), %s482_s0, 128, %s81_s20, [#allocation3]  }
  0x29   : > { %p491_p13 = scmp.ne.s32.totalorder %s489_s18, 0 }
  0x2a   : > { %p492_p1 = scmp.eq.s32.totalorder (!%p491_p13), %s373_s10, 0 }
  0x2b   : > { %93 = sbr.rel (%p491_p13) target bundleno = 77 (0x4d), region = 24 }
  0x32   : > { %317 = dma.done.wait (%p492_p1), [#allocation3], 128   ;;  %p493_p0 = pmov %p492_p1 }
  0x33   : > { %s105_s3 = sand.u32 1, %s330_s7   ;;  %s191_s13 = sshll.u32 %s373_s10, 7  ;;  %v108_v0 = vld [vmem:[#allocation2] sm:$0xff] }
  0x34   : > { %319 = vsyncadd (%p493_p0), [#allocation3], 4294967168  ;;  %s189_s4 = sshll.u32 %s105_s3, 3  ;;  %v109_v1 = vadd.f32 1.0, %v108_v0  ;;  %s442_s19 = scalar_lea.hbm %s483_s1, %s191_s13 }
  0x35   : > { %s107_s5 = scalar_lea.vmem [#allocation5], %s189_s4  ;;  %s112_s20 = scalar_lea.sflag [#allocation4], %s105_s3 }
  0x36   : > { %s125_s11 = sshll.u32 %s107_s5, 4  ;;  %110 = vst [vmem:[%s107_s5] sm:$0xff] %v109_v1  ;;  %p494_p6 = scmp.ne.s32.totalorder %s487_s16, 0  ;;  %s437_s11 = int_to_ptr.vmem [resolvable:$true] %s125_s11 }
  0x37   : > { %s272_s21 = scalar_lea.vmem %s437_s11, 128  ;;  %s341_s10 = smov [#allocation5]  }
  0x38   : > { %p273_p5 = scmp.ne.s32.totalorder %s437_s11, %s272_s21  ;;  %s276_s22 = sshll.u32 %s341_s10, 4  ;;  %s277_s22 = int_to_ptr.vmem [resolvable:$false] %s276_s22 }
  0x39   : > { %s278_s23 = scalar_lea.vmem %s277_s22, 256  ;;  %p279_p12 = scmp.lt.s32.totalorder %s437_s11, %s277_s22 }
  0x3a   : > { %p274_p9 = pnand %p273_p5, %p494_p6  ;;  %p280_p2 = scmp.lt.s32.totalorder %s278_s23, %s272_s21 }
  0x3c   : > { %p275_p10 = pneg %p274_p9  ;;  %p281_p3 = por %p280_p2, %p279_p12 }
  0x3e   : > { %p282_p4 = pnand %p281_p3, %p275_p10 }
  0x40   : > { %285 = shalt.err (!%p282_p4)
}
  0x41   : > { %s286_s24 = scalar_lea.hbm %s442_s19, 128  ;;  %s290_s27 = scalar_lea.hbm %s483_s1, 256 }
  0x42   : > { %p287_p7 = scmp.ne.s32.totalorder %s442_s19, %s286_s24  ;;  %p291_p13 = scmp.lt.u32.totalorder %s442_s19, %s483_s1 }
  0x43   : > { %p292_p1 = scmp.lt.u32.totalorder %s290_s27, %s286_s24  ;;  %p294_p5 = scmp.lt.u32.totalorder %s286_s24, %s442_s19 }
  0x44   : > { %p288_p8 = pnand %p287_p7, %p494_p6 }
  0x45   : > { %p293_p0 = por %p292_p1, %p291_p13 }
  0x46   : > { %p289_p11 = pneg %p288_p8 }
  0x47   : > { %p295_p9 = por %p294_p5, %p293_p0 }
  0x49   : > { %p296_p10 = pnand %p295_p9, %p289_p11 }
  0x4b   : > { %299 = shalt.err (!%p296_p10)
}
  0x4c   : > { %198 = dma.vmem_to_hbm [thread:$0]  (%p494_p6), %s437_s11, 128, %s442_s19, %s112_s20  }
  0x4d PF: > { %p210_p12 = scmp.ge.s32.totalorder %s338_s9, 2  ;;  %s137_s30 = sand.u32 1, %s326_s6  }
  0x4e   : > { %p495_p2 = scmp.ne.s32.totalorder %s488_s17, 0  ;;  %s138_s2 = scalar_lea.sflag [#allocation4], %s137_s30 }
  0x50   : > { %p205_p3 = pnand %p210_p12, %p495_p2 }
  0x52   : > { %321 = dma.done.wait (!%p205_p3), %s138_s2, 128  }
  0x53   : > { %323 = vsyncadd (!%p205_p3), %s138_s2, 4294967168  ;;  %p12_p4 = scmp.ge.s32.totalorder %s377_s12, 4   ;;  %s496_s6 = smov %s330_s7 }
  0x54   : > { %s497_s7 = smov %s334_s8  ;;  %s498_s8 = smov %s388_s15 }
  0x55   : > { %s499_s9 = smov %s377_s12  ;;  %14 = sbr.rel (!%p12_p4) target bundleno = 4 (0x4), region = 61 }
  0x5c   :  { %143 = vsyncpa [#allocation3], 1 }
  0x5d   :  { %145 = vsyncpa [#allocation3 + $0x1], 1 }
  0x5e   :  { %146 = vsyncpa [#allocation4], 1 }
  0x5f   :  { %148 = vsyncpa [#allocation4 + $0x1], 1 }

// kernel: tpu_custom_call.1
= control target key start
LH: loop header
LB: loop body
LE: loop exit
PB: predicated region body
PF: predicated region fallthrough
CT: control target
= control target key end

     0   :  { %vm37_vm0 = vcmask 64512   ;;  %v475_v0 = vmov 0.0   ;;  %vm476_vm1 = vmmov 0   ;;  %v477_v4 = vmov 0.0|0.0   ;;  %s648_s1 = inlined_call_operand.vmem [shape: f32[8,128], index: 1, kind: input, shape index: {}]   ;;  %s649_s0 = inlined_call_operand.vmem [shape: f32[2,8], index: 0, kind: input, shape index: {}]   ;;  %s650_s3 = inlined_call_operand.vmem [shape: f32[128,128], index: 3, kind: input, shape index: {}]   ;;  %s651_s5 = inlined_call_operand.vmem [shape: f32[128,1], index: 5, kind: input, shape index: {}]   ;;  %s652_s2 = inlined_call_operand.vmem [shape: f32[1,128], index: 2, kind: input, shape index: {}]   ;;  %s653_s6 = inlined_call_operand.<no memory space> [shape: f32[1,1], index: 6, kind: input, shape index: {}]   ;;  %s654_s4 = inlined_call_operand.vmem [shape: f32[1,128], index: 4, kind: input, shape index: {}]   ;;  %s655_s7 = inlined_call_operand.vmem [shape: f32[2,1], index: 7, kind: output, shape index: {}]  }
   0x1   :  { %345 = vmatprep.subr.mxu0 %v475_v0  ;;  %v29_v1 = vld [vmem:[%s648_s1] sm:$0xff]  ;;  %347 = vmatprep.mubr.msk.f32.mxu0 %vm476_vm1, %v475_v0  ;;  %v113_v5 = vld [vmem:[%s650_s3 + $0x8] sm:$0xff]  ;;  %v114_v6 = vld [vmem:[%s650_s3 + $0x10] sm:$0xff]  ;;  %v12_v57 = vstv %s653_s6  ;;  %vm299_vm2 = vcmask 1024  }
   0x2   :  { %v28_v2 = vld [vmem:[%s649_s0] sm:$0x3]  ;;  %346 = vmatpush3.msra.mxu0 %v29_v1  ;;  %420 = vmatprep.subr.bf16.mxu1 %v477_v4  ;;  %v115_v7 = vld [vmem:[%s650_s3 + $0x18] sm:$0xff]  ;;  %v117_v11 = vld [vmem:[%s650_s3 + $0x28] sm:$0xff]  ;;  %13 = vst [vmem:[#allocation2] sm:$0x1] %v12_v57 }
   0x3   :  { %v112_v3 = vld [vmem:[%s650_s3] sm:$0xff]  ;;  %348 = vmatmul.mubr.msk.f32.vlgmr.msra.gmra.mrb[0].mxu0 %vm37_vm0, %v28_v2  ;;  %382 = vmatprep.mubr.msk.f32.mxu1 %vm476_vm1, %v475_v0  ;;  %v424_v9 = vpack.c.bf16 %v115_v7, %v114_v6  ;;  %v118_v13 = vld [vmem:[%s650_s3 + $0x30] sm:$0xff]  ;;  %v119_v14 = vld [vmem:[%s650_s3 + $0x38] sm:$0xff] }
   0x4   :  { %v421_v8 = vpack.c.bf16 %v113_v5, %v112_v3  ;;  %444 = vmatprep.subr.bf16.mxu0 %v477_v4  ;;  %417 = vmatprep.mubr.msk.f32.mxu0 %vm476_vm1, %v475_v0  ;;  %v116_v10 = vld [vmem:[%s650_s3 + $0x20] sm:$0xff]  ;;  %v430_v15 = vpack.c.bf16 %v119_v14, %v118_v13  ;;  %v121_v17 = vld [vmem:[%s650_s3 + $0x48] sm:$0xff]  ;;  %v122_v19 = vld [vmem:[%s650_s3 + $0x50] sm:$0xff] }
   0x5   :  { %v427_v12 = vpack.c.bf16 %v117_v11, %v116_v10  ;;  %v120_v16 = vld [vmem:[%s650_s3 + $0x40] sm:$0xff]  ;;  %v123_v20 = vld [vmem:[%s650_s3 + $0x58] sm:$0xff]  ;;  %v125_v23 = vld [vmem:[%s650_s3 + $0x68] sm:$0xff] }
   0x6   :  { %422 = vmatpush3.bf16.msra.mxu1 %v421_v8  ;;  %v433_v18 = vpack.c.bf16 %v121_v17, %v120_v16  ;;  %v436_v21 = vpack.c.bf16 %v123_v20, %v122_v19  ;;  %v124_v22 = vld [vmem:[%s650_s3 + $0x60] sm:$0xff]  ;;  %v126_v25 = vld [vmem:[%s650_s3 + $0x70] sm:$0xff]  ;;  %v127_v26 = vld [vmem:[%s650_s3 + $0x78] sm:$0xff] }
   0x7   :  { %423 = vmatprep.subr.bf16.mxu1 %v477_v4  ;;  %v439_v24 = vpack.c.bf16 %v125_v23, %v124_v22  ;;  %v442_v27 = vpack.c.bf16 %v127_v26, %v126_v25  ;;  %v206_v28 = vld [vmem:[%s651_s5] sm:$0xff]  ;;  %v207_v29 = vld [vmem:[%s651_s5 + $0x8] sm:$0xff]  ;;  %v208_v30 = vld [vmem:[%s651_s5 + $0x10] sm:$0xff] }
   0x8   :  { %v445_v31 = vpack.c.bf16 %v207_v29, %v206_v28  ;;  %v209_v32 = vld [vmem:[%s651_s5 + $0x18] sm:$0xff]  ;;  %v210_v34 = vld [vmem:[%s651_s5 + $0x20] sm:$0xff]  ;;  %v211_v35 = vld [vmem:[%s651_s5 + $0x28] sm:$0xff] }
   0x9   :  { %v448_v33 = vpack.c.bf16 %v209_v32, %v208_v30  ;;  %v451_v36 = vpack.c.bf16 %v211_v35, %v210_v34  ;;  %v212_v37 = vld [vmem:[%s651_s5 + $0x30] sm:$0xff]  ;;  %v213_v38 = vld [vmem:[%s651_s5 + $0x38] sm:$0xff]  ;;  %v214_v40 = vld [vmem:[%s651_s5 + $0x40] sm:$0xff] }
   0xa   :  { %425 = vmatpush3.bf16.msra.mxu1 %v424_v9  ;;  %446 = vmatpush3.bf16.msra.mxu0 %v445_v31  ;;  %v454_v39 = vpack.c.bf16 %v213_v38, %v212_v37  ;;  %v215_v41 = vld [vmem:[%s651_s5 + $0x48] sm:$0xff]  ;;  %v305_v43 = vld [vmem:[%s652_s2] ss:$0 sm:$0xff]  ;;  %v216_v48 = vld [vmem:[%s651_s5 + $0x50] sm:$0xff] }
   0xb   :  { %426 = vmatprep.subr.bf16.mxu1 %v477_v4  ;;  %447 = vmatprep.subr.bf16.mxu0 %v477_v4  ;;  %v457_v42 = vpack.c.bf16 %v215_v41, %v214_v40  ;;  %v217_v49 = vld [vmem:[%s651_s5 + $0x58] sm:$0xff]  ;;  %v218_v51 = vld [vmem:[%s651_s5 + $0x60] sm:$0xff]  ;;  %v219_v52 = vld [vmem:[%s651_s5 + $0x68] sm:$0xff] }
   0xc   :  { %v460_v50 = vpack.c.bf16 %v217_v49, %v216_v48  ;;  %v463_v53 = vpack.c.bf16 %v219_v52, %v218_v51  ;;  %v220_v54 = vld [vmem:[%s651_s5 + $0x70] sm:$0xff]  ;;  %v221_v55 = vld [vmem:[%s651_s5 + $0x78] sm:$0xff]  ;;  %v307_v58 = vld [vmem:[%s654_s4] ss:$0 sm:$0xff] }
   0xd   :  { %v466_v56 = vpack.c.bf16 %v221_v55, %v220_v54  ;;  %v308_v63 = vld [vmem:[#allocation2] ss:$0 sm:$0xff] }
   0xe   :  { %428 = vmatpush3.bf16.msra.mxu1 %v427_v12  ;;  %449 = vmatpush3.bf16.msra.mxu0 %v448_v33 }
   0xf   :  { %429 = vmatprep.subr.bf16.mxu1 %v477_v4  ;;  %450 = vmatprep.subr.bf16.mxu0 %v477_v4 }
  0x12   :  { %431 = vmatpush3.bf16.msra.mxu1 %v430_v15  ;;  %452 = vmatpush3.bf16.msra.mxu0 %v451_v36 }
  0x13   :  { %432 = vmatprep.subr.bf16.mxu1 %v477_v4  ;;  %453 = vmatprep.subr.bf16.mxu0 %v477_v4 }
  0x16   :  { %434 = vmatpush3.bf16.msra.mxu1 %v433_v18  ;;  %455 = vmatpush3.bf16.msra.mxu0 %v454_v39 }
  0x17   :  { %435 = vmatprep.subr.bf16.mxu1 %v477_v4  ;;  %456 = vmatprep.subr.bf16.mxu0 %v477_v4 }
  0x1a   :  { %437 = vmatpush3.bf16.msra.mxu1 %v436_v21  ;;  %458 = vmatpush3.bf16.msra.mxu0 %v457_v42 }
  0x1b   :  { %438 = vmatprep.subr.bf16.mxu1 %v477_v4  ;;  %459 = vmatprep.subr.bf16.mxu0 %v477_v4 }
  0x1e   :  { %440 = vmatpush3.bf16.msra.mxu1 %v439_v24  ;;  %461 = vmatpush3.bf16.msra.mxu0 %v460_v50 }
  0x1f   :  { %441 = vmatprep.subr.bf16.mxu1 %v477_v4  ;;  %462 = vmatprep.subr.bf16.mxu0 %v477_v4 }
  0x22   :  { %443 = vmatpush3.bf16.msra.mxu1 %v442_v27  ;;  %464 = vmatpush3.bf16.msra.mxu0 %v463_v53 }
  0x23   :  { %465 = vmatprep.subr.bf16.mxu0 %v477_v4 }
  0x26   :  { %467 = vmatpush3.bf16.msra.mxu0 %v466_v56 }
  0xd6   :  { %v107_v44 = vpop.f32.mrb[0].mxu0 }
  0xd7   :  { %v108_v45 = vadd.f32 %v305_v43, %v107_v44  ;;  %v349_v46 = vpop.f32.mrb[1].mxu0 }
  0xd9   :  { %471 = vtanh.f32 %v108_v45 }
  0xe3   :  { %v472_v47 = vpop.eup %471 }
  0xe4   :  { %383 = vmatmul.mubr.f32.vlgmr.msra.gmra.mrb[0].mxu1 %v472_v47 }
 0x1b7   :  { %v201_v59 = vpop.f32.mrb[0].mxu1 }
 0x1b8   :  { %v202_v60 = vadd.f32 %v307_v58, %v201_v59  ;;  %v384_v61 = vpop.f32.mrb[1].mxu1 }
 0x1ba   :  { %473 = vtanh.f32 %v202_v60 }
 0x1c4   :  { %v474_v62 = vpop.eup %473 }
 0x1c5   :  { %418 = vmatmul.mubr.f32.vlgmr.msra.gmra.mrb[2].mxu0 %v474_v62 }
 0x298   :  { %v295_v0 = vpop.f32.mrb[2].mxu0 }
 0x299   :  { %v296_v1 = vadd.f32 %v308_v63, %v295_v0  ;;  %v419_v2 = vpop.f32.mrb[3].mxu0 }
 0x29b   :  { %300 = vst.msk [vmem:[%s655_s7] sm:$0x3] %vm299_vm2, %v296_v1 }

</bundles_post_ra>
